<compile_context>
chip_gen: v6e
topology: v6e:2x2x1
jax: 0.10.0
libtpu: 0.0.40
codegen_flags: <defaults>
</compile_context>

<pallas_src>
import functools

import jax
import jax.numpy as jnp
from jax.experimental import pallas as pl
from jax.experimental.pallas import tpu as pltpu


def _round_up(x, m):
    return ((x + m - 1) // m) * m


# ---------------------------------------------------------------------------
# TPU-generation-aware tile defaults:  (tm_target, ti_target)
#   tm sets arithmetic intensity (~tm FLOP per weight byte), ti sets how many
#   accumulator read-modify-write passes per token tile.
# ---------------------------------------------------------------------------
_TILE_DEFAULTS = {
    "v7x": (512, 512),    # crossover ~311 FLOP/B; 64 MiB VMEM per TC
    "v6e": (1024, 512),   # crossover ~680 FLOP/B; 128 MiB VMEM
    "v5p": (512, 512),
    "v5e": (384, 1024),   # already near crossover; bigger ti cuts acc RMW traffic
    "v4": (512, 512),
    "unknown": (512, 512),
}


def _tpu_target():
    """Best-effort detection -> (generation, vmem_bytes_per_core, tensorcores/chip)."""
    kind = ""
    try:
        kind = jax.devices()[0].device_kind.lower()
    except Exception:
        pass
    vmem = None
    try:
        vmem = int(pltpu.get_tpu_info().vmem_capacity_bytes)
    except Exception:
        vmem = None
    if "v7" in kind:
        return "v7x", vmem or (64 << 20), 2
    if "v6" in kind:
        return "v6e", vmem or (128 << 20), 1
    if "v5p" in kind:
        return "v5p", vmem or (128 << 20), 2
    if "v5" in kind:
        return "v5e", vmem or (128 << 20), 1
    if "v4" in kind:
        return "v4", vmem or (128 << 20), 2
    return "unknown", vmem or (64 << 20), 1


# ---------------------------------------------------------------------------
# Kernel
# ---------------------------------------------------------------------------
def _mlp_kernel(x_ref, wu_ref, wd_ref, o_ref, acc_ref, *, act):
    # x_ref  : (tm, H)  token tile            (resident across the I axis)
    # wu_ref : (H, ti)  up-proj weight tile   (streams along the I axis)
    # wd_ref : (ti, H)  down-proj weight tile (streams along the I axis)
    # o_ref  : (tm, H)  output tile           (resident across the I axis)
    # acc_ref: (tm, H)  f32 accumulator scratch
    i_idx = pl.program_id(1)

    up = jnp.dot(x_ref[...], wu_ref[...], preferred_element_type=jnp.float32)
    if act == "silu":
        a = up * jax.nn.sigmoid(up)                 # SiLU on the f32 path (EUP)
    elif act in ("gelu", "gelu_new"):
        a = jax.nn.gelu(up, approximate=(act == "gelu_new"))
    elif act == "relu":
        a = jnp.maximum(up, 0.0)
    else:
        raise NotImplementedError(f"hidden_act={act!r}")
    down = jnp.dot(a.astype(wd_ref.dtype), wd_ref[...],
                   preferred_element_type=jnp.float32)

    # First i-step writes straight into the accumulator: saves a zero-init
    # pass plus a full (tm, H) VPU add / extra store per token tile.
    @pl.when(i_idx == 0)
    def _():
        acc_ref[...] = down

    @pl.when(i_idx > 0)
    def _():
        acc_ref[...] += down

    @pl.when(i_idx == pl.num_programs(1) - 1)
    def _():
        o_ref[...] = acc_ref[...].astype(o_ref.dtype)


# ---------------------------------------------------------------------------
# One-time weight preparation (hoisted out of the forward path)
# ---------------------------------------------------------------------------
def prepare_mlp_weights(w_up, w_down, *, compute_dtype=jnp.bfloat16):
    """Transpose / cast / pad the MLP weights once at init.

    w_up   : [I, H]  up_proj.weight   (PyTorch (out_features, in_features))
    w_down : [H, I]  down_proj.weight

    Returns (w_up_t [H, I'], w_down_t [I', H]) transposed, cast to
    compute_dtype (default bf16: 2x MXU rate, half the weight HBM bytes),
    with I zero-padded to a multiple of 128 so the forward never pads or
    casts weights per call.  Padded channels contribute exactly 0
    (act(0) = 0, padded down-proj rows are 0).
    """
    I, H = w_up.shape
    assert w_down.shape == (H, I)
    w_up_t = jnp.asarray(w_up).T
    w_down_t = jnp.asarray(w_down).T
    I_pad = _round_up(I, 128)
    if I_pad != I:
        w_up_t = jnp.pad(w_up_t, ((0, 0), (0, I_pad - I)))
        w_down_t = jnp.pad(w_down_t, ((0, I_pad - I), (0, 0)))
    if compute_dtype is not None:
        w_up_t = w_up_t.astype(compute_dtype)
        w_down_t = w_down_t.astype(compute_dtype)
    return w_up_t, w_down_t


# ---------------------------------------------------------------------------
# Forward
# ---------------------------------------------------------------------------
def graphsgpt_mlp(x, w_up_t, w_down_t, *, hidden_act="silu",
                  tm=None, ti=None, out_dtype=None):
    """Fused GraphsGPTMLP forward: down_proj(act(up_proj(x))).

    x        : [B, S, H]
    w_up_t   : [H, I] = up_proj.weight.T    (pre-transposed / pre-cast; see
    w_down_t : [I, H] = down_proj.weight.T   prepare_mlp_weights)
    """
    B, S, H = x.shape
    Hw, I = w_up_t.shape
    assert Hw == H and w_down_t.shape == (I, H)
    if hidden_act not in ("silu", "gelu", "gelu_new", "relu"):
        # Zero-padded I channels rely on act(0) == 0.
        raise NotImplementedError(f"hidden_act={hidden_act!r}")

    out_dtype = x.dtype if out_dtype is None else out_dtype
    compute_dtype = w_up_t.dtype
    if x.dtype != compute_dtype:
        x = x.astype(compute_dtype)  # activations only; weights pre-cast at init

    gen, vmem_cap, num_tc = _tpu_target()
    tm_target, ti_target = _TILE_DEFAULTS.get(gen, _TILE_DEFAULTS["unknown"])
    tm = tm_target if tm is None else tm
    ti = ti_target if ti is None else ti

    M = B * S
    x2 = x.reshape(M, H)

    in_isz = jnp.dtype(compute_dtype).itemsize
    out_isz = jnp.dtype(out_dtype).itemsize
    row_mult = {4: 8, 2: 16, 1: 32}.get(in_isz, 8)  # sublane packing multiple

    # ---- token tile (the roofline lever) ------------------------------------
    tm = _round_up(max(min(tm, _round_up(M, row_mult)), row_mult), row_mult)
    if num_tc >= 2:
        # Guarantee >= 2 M tiles so both TensorCores get work ("parallel" axis).
        while tm >= M and tm > row_mult and M > row_mult:
            tm = max(row_mult, _round_up((tm + 1) // 2, row_mult))

    # ---- intermediate tile: prefer a divisor of I so the forward never pads
    #      the weight matrices per call (prepare_mlp_weights pads once at init).
    need_pad_i = False
    if I <= ti:
        ti = I
        I_pad = I
    else:
        div = None
        for cand in range((ti // 128) * 128, 127, -128):
            if I % cand == 0:
                div = cand
                break
        if div is not None:
            ti = div
            I_pad = I
        else:
            # Ragged I not prepared at init; pad per call (perf, not correctness).
            ti = _round_up(min(ti, I), 128)
            I_pad = _round_up(I, ti)
            need_pad_i = True

    # ---- VMEM budget: physical capacity minus headroom ----------------------
    budget = (vmem_cap * 7) // 8

    def _est(tm_, ti_, io_bufs):
        return (io_bufs * tm_ * H * in_isz       # x tile(s)
                + 2 * H * ti_ * in_isz           # W_up^T tile (double-buffered)
                + 2 * ti_ * H * in_isz           # W_down^T tile (double-buffered)
                + io_bufs * tm_ * H * out_isz    # out tile(s)
                + tm_ * H * 4                    # f32 accumulator scratch
                + tm_ * ti_ * (4 + in_isz)       # f32 up/act + its cast copy
                + (2 << 20))                     # Mosaic internal scratch slack

    io_bufs = 2
    while _est(tm, ti, io_bufs) > budget:
        if io_bufs == 2:
            # x/out block indices are constant across the inner i axis;
            # double-buffering them only burns VMEM under pressure.
            io_bufs = 1
            continue
        smaller_ti = None
        if ti > 128:
            for cand in range(((ti - 1) // 128) * 128, 127, -128):
                if I_pad % cand == 0:
                    smaller_ti = cand
                    break
        if smaller_ti is not None:
            ti = smaller_ti
            continue
        if tm > row_mult:
            tm = max(row_mult, _round_up(tm // 2, row_mult))
            continue
        break

    vmem_limit = int(min(budget, max(_est(tm, ti, io_bufs) * 5 // 4, 32 << 20)))

    # ---- pad ragged dims (padded rows / channels contribute exactly 0) ------
    M_pad = _round_up(M, tm)
    if M_pad != M:
        x2 = jnp.pad(x2, ((0, M_pad - M), (0, 0)))
    if need_pad_i and I_pad != I:
        w_up_t = jnp.pad(w_up_t, ((0, 0), (0, I_pad - I)))
        w_down_t = jnp.pad(w_down_t, ((0, I_pad - I), (0, 0)))

    grid = (M_pad // tm, I_pad // ti)

    io_pipe = {} if io_bufs == 2 else {"pipeline_mode": pl.Buffered(1)}
    x_spec = pl.BlockSpec((tm, H), lambda m, i: (m, 0), **io_pipe)
    o_spec = pl.BlockSpec((tm, H), lambda m, i: (m, 0), **io_pipe)

    out = pl.pallas_call(
        functools.partial(_mlp_kernel, act=hidden_act),
        out_shape=jax.ShapeDtypeStruct((M_pad, H), out_dtype),
        grid_spec=pltpu.PrefetchScalarGridSpec(
            num_scalar_prefetch=0,
            grid=grid,
            in_specs=[
                x_spec,                                      # x (resident over i)
                pl.BlockSpec((H, ti), lambda m, i: (0, i)),  # W_up^T  I-tile
                pl.BlockSpec((ti, H), lambda m, i: (i, 0)),  # W_down^T I-tile
            ],
            out_specs=o_spec,
            scratch_shapes=[pltpu.VMEM((tm, H), jnp.float32)],
        ),
        compiler_params=pltpu.CompilerParams(
            dimension_semantics=("parallel", "arbitrary"),
            vmem_limit_bytes=vmem_limit,
        ),
    )(x2, w_up_t, w_down_t)

    if M_pad != M:
        out = out[:M]
    return out.reshape(B, S, H)


# ---------------------------------------------------------------------------
# Pure-JAX reference (PyTorch weight layout)
# ---------------------------------------------------------------------------
def _reference(x, w_up, w_down, precision=None):
    up = jnp.einsum("bsh,ih->bsi", x, w_up, precision=precision)
    act = up * jax.nn.sigmoid(up)
    return jnp.einsum("bsi,hi->bsh", act, w_down, precision=precision)


if __name__ == "__main__":
    key = jax.random.PRNGKey(0)

    # Shapes consistent with the module: batch=2, seq=8, hidden=32, intermediate=128
    B, S, H, I = 2, 8, 32, 128
    k_x, k_up, k_dn = jax.random.split(key, 3)
    x = jax.random.normal(k_x, (B, S, H), dtype=jnp.float32)
    # PyTorch layout: Linear.weight is [out_features, in_features]
    w_up = jax.random.normal(k_up, (I, H), dtype=jnp.float32) * (1.0 / H) ** 0.5
    w_down = jax.random.normal(k_dn, (H, I), dtype=jnp.float32) * (1.0 / I) ** 0.5

    ref = _reference(x, w_up, w_down)

    # f32 weights: tight tolerance.
    wu32, wd32 = prepare_mlp_weights(w_up, w_down, compute_dtype=jnp.float32)
    out32 = jax.block_until_ready(graphsgpt_mlp(x, wu32, wd32))
    assert out32.shape == (B, S, H)
    assert jnp.allclose(out32, ref, atol=1e-4, rtol=1e-4)

    # bf16 weights (default init path): looser tolerance for quantization.
    wubf, wdbf = prepare_mlp_weights(w_up, w_down)
    outbf = jax.block_until_ready(graphsgpt_mlp(x, wubf, wdbf))
    assert outbf.shape == (B, S, H) and outbf.dtype == x.dtype
    assert jnp.allclose(outbf, ref, atol=1e-1, rtol=1e-1)

    # A second shape that exercises the multi-step I reduction (grid_i > 1)
    # and multiple token tiles.
    B2, S2, H2, I2 = 2, 64, 128, 512
    k_x2, k_up2, k_dn2 = jax.random.split(jax.random.PRNGKey(0), 3)
    x2 = jax.random.normal(k_x2, (B2, S2, H2), dtype=jnp.float32)
    w_up2 = jax.random.normal(k_up2, (I2, H2), dtype=jnp.float32) * (1.0 / H2) ** 0.5
    w_down2 = jax.random.normal(k_dn2, (H2, I2), dtype=jnp.float32) * (1.0 / I2) ** 0.5
    wu2, wd2 = prepare_mlp_weights(w_up2, w_down2, compute_dtype=jnp.float32)
    out2 = jax.block_until_ready(graphsgpt_mlp(x2, wu2, wd2, tm=64, ti=256))
    ref2 = _reference(x2, w_up2, w_down2, precision=jax.lax.Precision.HIGHEST)
    assert out2.shape == (B2, S2, H2)
    assert jnp.allclose(out2, ref2, atol=2e-2, rtol=2e-2)

    print("KERNEL_OK")
</pallas_src>

<mosaic_0001>
module attributes {stable_mosaic.version = 11 : i64} {
  func.func @_mlp_kernel(%arg0: i32, %arg1: i32, %arg2: memref<16x32xf32, #tpu.memory_space<vmem>>, %arg3: memref<32x128xf32, #tpu.memory_space<vmem>>, %arg4: memref<128x32xf32, #tpu.memory_space<vmem>>, %arg5: memref<16x32xf32, #tpu.memory_space<vmem>>, %arg6: memref<16x32xf32, #tpu.memory_space<vmem>>) attributes {dimension_semantics = [#tpu.dimension_semantics<parallel>, #tpu.dimension_semantics<arbitrary>], iteration_bounds = array<i64: 1, 1>, scalar_prefetch = 0 : i64, scratch_operands = 1 : i64, tpu.core_type = #tpu.core_type<tc>, window_params = [{transform_indices = @transform_0, window_bounds = array<i64: 16, 32>}, {transform_indices = @transform_1, window_bounds = array<i64: 32, 128>}, {transform_indices = @transform_2, window_bounds = array<i64: 128, 32>}, {transform_indices = @transform_3, window_bounds = array<i64: 16, 32>}]} {
    %c0 = arith.constant 0 : index
    %c0_0 = arith.constant 0 : index
    %0 = vector.load %arg2[%c0, %c0_0] : memref<16x32xf32, #tpu.memory_space<vmem>>, vector<16x32xf32>
    %c0_1 = arith.constant 0 : index
    %c0_2 = arith.constant 0 : index
    %1 = vector.load %arg3[%c0_1, %c0_2] : memref<32x128xf32, #tpu.memory_space<vmem>>, vector<32x128xf32>
    %cst = arith.constant dense<0.000000e+00> : vector<16x128xf32>
    %2 = tpu.matmul %0, %1, %cst {dimension_numbers = #tpu.dot_dimension_numbers<[1], [0], [0], [1], [0, 0, 1, 1], [], []>} : vector<16x32xf32>, vector<32x128xf32>, vector<16x128xf32> -> vector<16x128xf32>
    %3 = arith.negf %2 : vector<16x128xf32>
    %4 = math.exp %3 : vector<16x128xf32>
    %cst_3 = arith.constant 1.000000e+00 : f32
    %5 = vector.broadcast %cst_3 : f32 to vector<16x128xf32>
    %6 = arith.addf %5, %4 : vector<16x128xf32>
    %7 = arith.divf %5, %6 : vector<16x128xf32>
    %8 = arith.mulf %2, %7 : vector<16x128xf32>
    %c0_4 = arith.constant 0 : index
    %c0_5 = arith.constant 0 : index
    %9 = vector.load %arg4[%c0_4, %c0_5] : memref<128x32xf32, #tpu.memory_space<vmem>>, vector<128x32xf32>
    %cst_6 = arith.constant dense<0.000000e+00> : vector<16x32xf32>
    %10 = tpu.matmul %8, %9, %cst_6 {dimension_numbers = #tpu.dot_dimension_numbers<[1], [0], [0], [1], [0, 0, 1, 1], [], []>} : vector<16x128xf32>, vector<128x32xf32>, vector<16x32xf32> -> vector<16x32xf32>
    %c0_i32 = arith.constant 0 : i32
    %11 = arith.cmpi eq, %arg1, %c0_i32 : i32
    %12 = arith.extui %11 : i1 to i32
    %c0_i32_7 = arith.constant 0 : i32
    %13 = arith.cmpi ne, %12, %c0_i32_7 : i32
    scf.if %13 {
      %c0_12 = arith.constant 0 : index
      %c0_13 = arith.constant 0 : index
      %20 = vector.load %arg6[%c0_12, %c0_13] : memref<16x32xf32, #tpu.memory_space<vmem>>, vector<16x32xf32>
      tpu.vector_store %arg6[%c0_12, %c0_13], %10 {strides = array<i32>} : memref<16x32xf32, #tpu.memory_space<vmem>>, vector<16x32xf32>,
    } else {
    }
    %c0_i32_8 = arith.constant 0 : i32
    %14 = arith.cmpi sgt, %arg1, %c0_i32_8 : i32
    %15 = arith.extui %14 : i1 to i32
    %c0_i32_9 = arith.constant 0 : i32
    %16 = arith.cmpi ne, %15, %c0_i32_9 : i32
    scf.if %16 {
      %c0_12 = arith.constant 0 : index
      %c0_13 = arith.constant 0 : index
      %20 = vector.load %arg6[%c0_12, %c0_13] : memref<16x32xf32, #tpu.memory_space<vmem>>, vector<16x32xf32>
      %21 = arith.addf %20, %10 : vector<16x32xf32>
      %c0_14 = arith.constant 0 : index
      %c0_15 = arith.constant 0 : index
      %22 = vector.load %arg6[%c0_14, %c0_15] : memref<16x32xf32, #tpu.memory_space<vmem>>, vector<16x32xf32>
      tpu.vector_store %arg6[%c0_14, %c0_15], %21 {strides = array<i32>} : memref<16x32xf32, #tpu.memory_space<vmem>>, vector<16x32xf32>,
    } else {
    }
    %c0_i32_10 = arith.constant 0 : i32
    %17 = arith.cmpi eq, %arg1, %c0_i32_10 : i32
    %18 = arith.extui %17 : i1 to i32
    %c0_i32_11 = arith.constant 0 : i32
    %19 = arith.cmpi ne, %18, %c0_i32_11 : i32
    scf.if %19 {
      %c0_12 = arith.constant 0 : index
      %c0_13 = arith.constant 0 : index
      %20 = vector.load %arg6[%c0_12, %c0_13] : memref<16x32xf32, #tpu.memory_space<vmem>>, vector<16x32xf32>
      %c0_14 = arith.constant 0 : index
      %c0_15 = arith.constant 0 : index
      %21 = vector.load %arg5[%c0_14, %c0_15] : memref<16x32xf32, #tpu.memory_space<vmem>>, vector<16x32xf32>
      tpu.vector_store %arg5[%c0_14, %c0_15], %20 {strides = array<i32>} : memref<16x32xf32, #tpu.memory_space<vmem>>, vector<16x32xf32>,
    } else {
    }
    return
  }
  func.func @transform_0(%arg0: i32, %arg1: i32) -> (i32, i32) {
    %c0_i32 = arith.constant 0 : i32
    %c0_i32_0 = arith.constant 0 : i32
    return %arg0, %c0_i32 : i32, i32
  }
  func.func @transform_1(%arg0: i32, %arg1: i32) -> (i32, i32) {
    %c0_i32 = arith.constant 0 : i32
    %c0_i32_0 = arith.constant 0 : i32
    return %c0_i32, %arg1 : i32, i32
  }
  func.func @transform_2(%arg0: i32, %arg1: i32) -> (i32, i32) {
    %c0_i32 = arith.constant 0 : i32
    %c0_i32_0 = arith.constant 0 : i32
    return %arg1, %c0_i32 : i32, i32
  }
  func.func @transform_3(%arg0: i32, %arg1: i32) -> (i32, i32) {
    %c0_i32 = arith.constant 0 : i32
    %c0_i32_0 = arith.constant 0 : i32
    return %arg0, %c0_i32 : i32, i32
  }
}

</mosaic_0001>

<bundles_post_ra>
// kernel: tpu_custom_call.1
= control target key start
LH: loop header
LB: loop body
LE: loop exit
PB: predicated region body
PF: predicated region fallthrough
CT: control target
= control target key end

     0   :  { %vm21_vm0 = vcmask 261120   ;;  %s452_s0 = inlined_call_operand.vmem [shape: f32[16,32], index: 0, kind: input, shape index: {}]   ;;  %s453_s1 = inlined_call_operand.vmem [shape: f32[32,128], index: 1, kind: input, shape index: {}]   ;;  %s454_s2 = inlined_call_operand.vmem [shape: f32[128,32], index: 2, kind: input, shape index: {}]   ;;  %s455_s3 = inlined_call_operand.hbm [shape: f32[16,32], index: 3, kind: output, shape index: {}]  }
   0x1   :  { %v20_v0 = vld [vmem:[%s453_s1 + $0x18] sm:$0xff]  ;;  %v19_v1 = vld [vmem:[%s453_s1 + $0x10] sm:$0xff]  ;;  %v15_v2 = vld [vmem:[%s452_s0] sm:$0xff] }
   0x2   :  { %275 = vmatprep.subr.mxu0 %v20_v0  ;;  %v18_v3 = vld [vmem:[%s453_s1 + $0x8] sm:$0xff]  ;;  %283 = vmatprep.mubr.msk.f32.mxu0 %vm21_vm0, %v15_v2 }
   0x3   :  { %276 = vmatpush3.msra.mxu0 %v20_v0 }
   0x4   :  { %8 = vsyncpa [#allocation4], 0  ;;  %277 = vmatprep.subr.mxu0 %v19_v1  ;;  %v17_v4 = vld [vmem:[%s453_s1] sm:$0xff]  ;;  %v16_v5 = vld [vmem:[%s452_s0 + $0x8] sm:$0xff] }
   0x5   :  { %278 = vmatpush3.msra.mxu0 %v19_v1  ;;  %v132_v6 = vld [vmem:[%s454_s2 + $0x78] sm:$0xff]  ;;  %v131_v7 = vld [vmem:[%s454_s2 + $0x70] sm:$0xff]  ;;  %v130_v8 = vld [vmem:[%s454_s2 + $0x68] sm:$0xff] }
   0x6   :  { %279 = vmatprep.subr.mxu0 %v18_v3  ;;  %286 = vmatprep.subr.mxu1 %v132_v6  ;;  %v129_v9 = vld [vmem:[%s454_s2 + $0x60] sm:$0xff]  ;;  %v128_v10 = vld [vmem:[%s454_s2 + $0x58] sm:$0xff]  ;;  %v127_v11 = vld [vmem:[%s454_s2 + $0x50] sm:$0xff] }
   0x7   :  { %280 = vmatpush3.msra.mxu0 %v18_v3  ;;  %287 = vmatpush3.msra.mxu1 %v132_v6  ;;  %v126_v12 = vld [vmem:[%s454_s2 + $0x48] sm:$0xff]  ;;  %v125_v13 = vld [vmem:[%s454_s2 + $0x40] sm:$0xff]  ;;  %v124_v14 = vld [vmem:[%s454_s2 + $0x38] sm:$0xff] }
   0x8   :  { %281 = vmatprep.subr.mxu0 %v17_v4  ;;  %288 = vmatprep.subr.mxu1 %v131_v7  ;;  %v123_v15 = vld [vmem:[%s454_s2 + $0x30] sm:$0xff]  ;;  %v122_v16 = vld [vmem:[%s454_s2 + $0x28] sm:$0xff]  ;;  %v121_v17 = vld [vmem:[%s454_s2 + $0x20] sm:$0xff] }
   0x9   :  { %282 = vmatpush3.msra.mxu0 %v17_v4  ;;  %289 = vmatpush3.msra.mxu1 %v131_v7  ;;  %v120_v18 = vld [vmem:[%s454_s2 + $0x18] sm:$0xff]  ;;  %v119_v19 = vld [vmem:[%s454_s2 + $0x10] sm:$0xff]  ;;  %v118_v20 = vld [vmem:[%s454_s2 + $0x8] sm:$0xff] }
   0xa   :  { %284 = vmatmul.mubr.msk.f32.vlgmr.msra.gmra.mxu0 %vm21_vm0, %v16_v5  ;;  %290 = vmatprep.subr.mxu1 %v130_v8  ;;  %v117_v21 = vld [vmem:[%s454_s2] sm:$0xff]  ;;  %s354_s2 = smov [#allocation3]  }
   0xb   :  { %291 = vmatpush3.msra.mxu1 %v130_v8  ;;  %s236_s27 = sshll.u32 %s354_s2, 4  ;;  %s237_s27 = int_to_ptr.vmem [resolvable:$true] %s236_s27 }
   0xc   :  { %292 = vmatprep.subr.mxu1 %v129_v9  ;;  %s332_s1 = scalar_lea.vmem %s237_s27, 256  ;;  %p337_p1 = scmp.lt.s32.totalorder %s237_s27, %s237_s27 }
   0xd   :  { %293 = vmatpush3.msra.mxu1 %v129_v9  ;;  %p333_p0 = scmp.ne.s32.totalorder %s237_s27, %s332_s1  ;;  %p338_p2 = scmp.lt.s32.totalorder %s332_s1, %s332_s1 }
   0xe   :  { %294 = vmatprep.subr.mxu1 %v128_v10 }
   0xf   :  { %295 = vmatpush3.msra.mxu1 %v128_v10  ;;  %p339_p3 = por %p338_p2, %p337_p1 }
  0x10   :  { %296 = vmatprep.subr.mxu1 %v127_v11 }
  0x11   :  { %297 = vmatpush3.msra.mxu1 %v127_v11  ;;  %p340_p4 = pnand %p339_p3, %p333_p0 }
  0x12   :  { %298 = vmatprep.subr.mxu1 %v126_v12 }
  0x13   :  { %299 = vmatpush3.msra.mxu1 %v126_v12 }
  0x14   :  { %300 = vmatprep.subr.mxu1 %v125_v13 }
  0x15   :  { %301 = vmatpush3.msra.mxu1 %v125_v13 }
  0x16   :  { %302 = vmatprep.subr.mxu1 %v124_v14 }
  0x17   :  { %303 = vmatpush3.msra.mxu1 %v124_v14 }
  0x18   :  { %304 = vmatprep.subr.mxu1 %v123_v15 }
  0x19   :  { %305 = vmatpush3.msra.mxu1 %v123_v15 }
  0x1a   :  { %306 = vmatprep.subr.mxu1 %v122_v16 }
  0x1b   :  { %307 = vmatpush3.msra.mxu1 %v122_v16 }
  0x1c   :  { %308 = vmatprep.subr.mxu1 %v121_v17 }
  0x1d   :  { %309 = vmatpush3.msra.mxu1 %v121_v17 }
  0x1e   :  { %310 = vmatprep.subr.mxu1 %v120_v18 }
  0x1f   :  { %311 = vmatpush3.msra.mxu1 %v120_v18 }
  0x20   :  { %312 = vmatprep.subr.mxu1 %v119_v19 }
  0x21   :  { %313 = vmatpush3.msra.mxu1 %v119_v19 }
  0x22   :  { %314 = vmatprep.subr.mxu1 %v118_v20 }
  0x23   :  { %315 = vmatpush3.msra.mxu1 %v118_v20 }
  0x24   :  { %316 = vmatprep.subr.mxu1 %v117_v21 }
  0x25   :  { %317 = vmatpush3.msra.mxu1 %v117_v21 }
  0xca   :  { %v285_v22 = vpop.f32.mrf.mxu0 }
  0xcb   :  { %v250_v23 = vmul.f32 -1.442695, %v285_v22 }
  0xcc   :  { %v94_v24 = vpop.f32.mrf.mxu0 }
  0xcd   :  { %324 = vpow2.f32 %v250_v23  ;;  %v249_v25 = vmul.f32 -1.442695, %v94_v24 }
  0xcf   :  { %326 = vpow2.f32 %v249_v25 }
  0xda   :  { %v325_v26 = vpop.eup %324 }
  0xdb   :  { %v110_v27 = vadd.f32 1.0, %v325_v26 }
  0xdc   :  { %v327_v28 = vpop.eup %326 }
  0xdd   :  { %v109_v29 = vadd.f32 1.0, %v327_v28  ;;  %328 = vrcp.f32 %v110_v27 }
  0xdf   :  { %330 = vrcp.f32 %v109_v29 }
  0xea   :  { %v329_v30 = vpop.eup %328 }
  0xeb   :  { %v116_v33 = vmul.f32 %v329_v30, %v285_v22 }
  0xec   :  { %v331_v31 = vpop.eup %330 }
  0xed   :  { %v115_v32 = vmul.f32 %v331_v31, %v94_v24 }
  0xef   :  { %318 = vmatprep.mubr.f32.mxu1 %v115_v32 }
  0xf0   :  { %319 = vmatmul.mubr.f32.vlgmr.msra.gmra.mxu1 %v116_v33 }
 0x1b0   :  { %v320_v34 = vpop.f32.mrf.mxu1 }
 0x1b1   :  { %213 = vst.msk [vmem:[#allocation2 + $0x8] sm:$0xff] %vm21_vm0, %v320_v34 }
 0x1b2   :  { %v199_v35 = vpop.f32.mrf.mxu1 }
 0x1b3   :  { %212 = vst.msk [vmem:[#allocation2] sm:$0xff] %vm21_vm0, %v199_v35 }
 0x1b8   :  { %v228_v36 = vld [vmem:[#allocation2 + $0x8] sm:$0xff] }
 0x1b9   :  { %230 = vst.msk [vmem:[#allocation3 + $0x8] sm:$0xff] %vm21_vm0, %v228_v36 }
 0x1ba   :  { %v227_v37 = vld [vmem:[#allocation2] sm:$0xff] }
 0x1bb   :  { %229 = vst.msk [vmem:[#allocation3] sm:$0xff] %vm21_vm0, %v227_v37 }
 0x1bc   :  { %343 = shalt.err (!%p340_p4)
}
 0x1bd   :  { %s355_s28 = smov 128   ;;  %s356_s0 = smov 8  }
 0x1be   :  { %242 = dma.vmem_to_hbm [thread:$0]  %s237_s27, 256, %s455_s3, [#allocation4], %s355_s28, %s355_s28, %s356_s0  }
 0x1bf   :  { %352 = dma.done.wait [#allocation4], 256  }
 0x1c0   :  { %353 = vsyncadd [#allocation4], 4294967040 }
 0x1c1   :  { %246 = vsyncpa [#allocation4], 1 }

</bundles_post_ra>
